<compile_context>
chip_gen: v7x
topology: tpu7x:2x2x1
jax: 0.10.0
libtpu: 0.0.40
codegen_flags: <defaults>
</compile_context>

<pallas_src>
import functools

import jax
import jax.numpy as jnp
import numpy as np
from jax import lax
from jax.experimental import pallas as pl
from jax.experimental.pallas import tpu as pltpu

K_PAD = 64     # 60 -> 64  (lane-friendly contraction dim)
H_PAD = 512    # 500 -> 512 (2 x 256 MXU, (8,128) aligned)
O_PAD = 128    # fc3 output padded to one full lane group


def _round_up(n, m):
    return (n + m - 1) // m * m


def _keep_mask(shape, seed_u32, tile_u32, salt, thr):
    """Boolean keep-mask with P(keep) ~= 1 - p, from a cheap integer hash."""
    r = lax.broadcasted_iota(jnp.int32, shape, 0).astype(jnp.uint32)
    c = lax.broadcasted_iota(jnp.int32, shape, 1).astype(jnp.uint32)
    x = (r * jnp.uint32(0x9E3779B1)) ^ (c * jnp.uint32(0x85EBCA77))
    x = x + seed_u32 + tile_u32 * jnp.uint32(0x27D4EB2F) \
        + jnp.uint32(salt) * jnp.uint32(0x165667B1)
    # murmur3 fmix32 finalizer (pure VPU uint32 ops)
    x = x ^ (x >> 16)
    x = x * jnp.uint32(0x85EBCA6B)
    x = x ^ (x >> 13)
    x = x * jnp.uint32(0xC2B2AE35)
    x = x ^ (x >> 16)
    return x >= jnp.uint32(thr)


def mlp_kernel(seed_ref, x_ref, w1_ref, b1_ref, w2_ref, b2_ref, w3_ref, b3_ref,
               o_ref, *, thr, use_dropout):
    seed_u32 = seed_ref[0].astype(jnp.uint32)
    tile_u32 = pl.program_id(0).astype(jnp.uint32)

    x = x_ref[...]                                   # (TB, 64) f32

    # fc1 + ReLU + dropout   (bf16 MXU, f32 accumulate, f32 elementwise)
    h = jnp.dot(x.astype(jnp.bfloat16), w1_ref[...],
                preferred_element_type=jnp.float32) + b1_ref[...]
    h = jnp.maximum(h, 0.0)
    if use_dropout:
        h = jnp.where(_keep_mask(h.shape, seed_u32, tile_u32, 1, thr), h, 0.0)

    # fc2 + ReLU + dropout   (1/(1-p) scale already folded into w2)
    h = jnp.dot(h.astype(jnp.bfloat16), w2_ref[...],
                preferred_element_type=jnp.float32) + b2_ref[...]
    h = jnp.maximum(h, 0.0)
    if use_dropout:
        h = jnp.where(_keep_mask(h.shape, seed_u32, tile_u32, 2, thr), h, 0.0)

    # fc3 (output padded to 128 lanes -> lane-dense, unmasked stores)
    out = jnp.dot(h.astype(jnp.bfloat16), w3_ref[...],
                  preferred_element_type=jnp.float32) + b3_ref[...]
    o_ref[...] = out.astype(o_ref.dtype)


def prepare_params(params, dropout_p):
    """Transpose, zero-pad, fold dropout scale, and cast weights to bf16. Once."""
    w1, b1, w2, b2, w3, b3 = params
    scale = 1.0 / (1.0 - dropout_p) if dropout_p > 0.0 else 1.0

    w1_t = jnp.zeros((K_PAD, H_PAD), jnp.float32).at[:60, :500].set(w1.T)
    b1_p = jnp.zeros((1, H_PAD), jnp.float32).at[0, :500].set(b1)
    w2_t = jnp.zeros((H_PAD, H_PAD), jnp.float32).at[:500, :500].set(w2.T * scale)
    b2_p = jnp.zeros((1, H_PAD), jnp.float32).at[0, :500].set(b2)
    w3_t = jnp.zeros((H_PAD, O_PAD), jnp.float32).at[:500, :1].set(w3.T * scale)
    b3_p = jnp.zeros((1, O_PAD), jnp.float32).at[0, :1].set(b3)

    return (w1_t.astype(jnp.bfloat16), b1_p,
            w2_t.astype(jnp.bfloat16), b2_p,
            w3_t.astype(jnp.bfloat16), b3_p)


def mlp_forward(x, prepared, *, dropout_p, seed):
    """x: (B, 60) float32. Returns (B,) float32 (== x.view(-1) of the PyTorch module)."""
    w1, b1, w2, b2, w3, b3 = prepared
    B = x.shape[0]

    # Batch tile: biggest of {8..512} multiples of 8; pad batch + feature dims.
    TB = min(512, _round_up(B, 8))
    B_pad = _round_up(B, TB)
    x_p = jnp.zeros((B_pad, K_PAD), jnp.float32).at[:B, :60].set(x)

    seed_arr = jnp.array([seed], dtype=jnp.int32)
    thr = min(int(float(dropout_p) * 4294967296.0), 4294967295)

    kernel = functools.partial(mlp_kernel, thr=thr,
                               use_dropout=float(dropout_p) > 0.0)

    grid_spec = pltpu.PrefetchScalarGridSpec(
        num_scalar_prefetch=1,
        grid=(B_pad // TB,),
        in_specs=[
            pl.BlockSpec((TB, K_PAD), lambda i, s: (i, 0)),     # x tile
            pl.BlockSpec((K_PAD, H_PAD), lambda i, s: (0, 0)),  # w1 (resident)
            pl.BlockSpec((1, H_PAD), lambda i, s: (0, 0)),      # b1
            pl.BlockSpec((H_PAD, H_PAD), lambda i, s: (0, 0)),  # w2
            pl.BlockSpec((1, H_PAD), lambda i, s: (0, 0)),      # b2
            pl.BlockSpec((H_PAD, O_PAD), lambda i, s: (0, 0)),  # w3
            pl.BlockSpec((1, O_PAD), lambda i, s: (0, 0)),      # b3
        ],
        out_specs=pl.BlockSpec((TB, O_PAD), lambda i, s: (i, 0)),
    )

    out = pl.pallas_call(
        kernel,
        out_shape=jax.ShapeDtypeStruct((B_pad, O_PAD), jnp.float32),
        grid_spec=grid_spec,
        compiler_params=pltpu.CompilerParams(
            dimension_semantics=("parallel",),
            vmem_limit_bytes=32 * 1024 * 1024,
        ),
    )(seed_arr, x_p, w1, b1, w2, b2, w3, b3)

    return out[:B, 0]


def init_params(key):
    """Deterministic parameter init with the same shapes as the PyTorch module."""
    k1, k2, k3, k4, k5, k6 = jax.random.split(key, 6)

    def uniform(k, shape, fan_in):
        bound = 1.0 / jnp.sqrt(fan_in)
        return jax.random.uniform(k, shape, jnp.float32, -bound, bound)

    w1 = uniform(k1, (500, 60), 60)      # fc1.weight
    b1 = uniform(k2, (500,), 60)         # fc1.bias
    w2 = uniform(k3, (500, 500), 500)    # fc2.weight
    b2 = uniform(k4, (500,), 500)        # fc2.bias
    w3 = uniform(k5, (1, 500), 500)      # fc3.weight
    b3 = uniform(k6, (1,), 500)          # fc3.bias
    return (w1, b1, w2, b2, w3, b3)


def _reference_no_dropout(x, params):
    """Pure-JAX f32 reference of the module with dropout disabled."""
    w1, b1, w2, b2, w3, b3 = params
    h = jnp.maximum(x @ w1.T + b1, 0.0)
    h = jnp.maximum(h @ w2.T + b2, 0.0)
    return (h @ w3.T + b3).reshape(-1)


if __name__ == "__main__":
    key = jax.random.PRNGKey(0)
    pkey, xkey = jax.random.split(key)

    params = init_params(pkey)

    B = 8
    x = jax.random.normal(xkey, (B, 60), dtype=jnp.float32)

    config = {"dropout": 0.1}

    # Forward with dropout active (training-mode F.dropout semantics).
    prepared = prepare_params(params, config["dropout"])
    y = mlp_forward(x, prepared, dropout_p=config["dropout"], seed=1234)
    jax.block_until_ready(y)
    assert y.shape == (B,), y.shape
    assert bool(jnp.all(jnp.isfinite(y)))

    # Sanity check against pure-JAX reference with dropout off (bf16 MXU -> loose tol).
    prepared_eval = prepare_params(params, 0.0)
    y_eval = mlp_forward(x, prepared_eval, dropout_p=0.0, seed=0)
    y_ref = _reference_no_dropout(x, params)
    np.testing.assert_allclose(np.asarray(y_eval), np.asarray(y_ref),
                               rtol=5e-2, atol=5e-2)

    print("KERNEL_OK")
</pallas_src>

<mosaic_0001>
module attributes {stable_mosaic.version = 11 : i64} {
  func.func @mlp_kernel(%arg0: i32, %arg1: memref<1xi32, #tpu.memory_space<smem>>, %arg2: memref<8x64xf32, #tpu.memory_space<vmem>>, %arg3: memref<64x512xbf16, #tpu.memory_space<vmem>>, %arg4: memref<1x512xf32, #tpu.memory_space<vmem>>, %arg5: memref<512x512xbf16, #tpu.memory_space<vmem>>, %arg6: memref<1x512xf32, #tpu.memory_space<vmem>>, %arg7: memref<512x128xbf16, #tpu.memory_space<vmem>>, %arg8: memref<1x128xf32, #tpu.memory_space<vmem>>, %arg9: memref<8x128xf32, #tpu.memory_space<vmem>>) attributes {dimension_semantics = [#tpu.dimension_semantics<parallel>], iteration_bounds = array<i64: 1>, scalar_prefetch = 1 : i64, scratch_operands = 0 : i64, tpu.core_type = #tpu.core_type<tc>, window_params = [{transform_indices = @transform_0, window_bounds = array<i64: 8, 64>}, {pipeline_mode = #tpu.pipeline_mode<synchronous>, transform_indices = @transform_1, window_bounds = array<i64: 64, 512>}, {pipeline_mode = #tpu.pipeline_mode<synchronous>, transform_indices = @transform_2, window_bounds = array<i64: 1, 512>}, {pipeline_mode = #tpu.pipeline_mode<synchronous>, transform_indices = @transform_3, window_bounds = array<i64: 512, 512>}, {pipeline_mode = #tpu.pipeline_mode<synchronous>, transform_indices = @transform_4, window_bounds = array<i64: 1, 512>}, {pipeline_mode = #tpu.pipeline_mode<synchronous>, transform_indices = @transform_5, window_bounds = array<i64: 512, 128>}, {pipeline_mode = #tpu.pipeline_mode<synchronous>, transform_indices = @transform_6, window_bounds = array<i64: 1, 128>}, {transform_indices = @transform_7, window_bounds = array<i64: 8, 128>}]} {
    %c0 = arith.constant 0 : index
    %0 = memref.load %arg1[%c0] : memref<1xi32, #tpu.memory_space<smem>>
    %c0_0 = arith.constant 0 : index
    %c0_1 = arith.constant 0 : index
    %1 = vector.load %arg2[%c0_0, %c0_1] : memref<8x64xf32, #tpu.memory_space<vmem>>, vector<8x64xf32>
    %2 = arith.truncf %1 : vector<8x64xf32> to vector<8x64xbf16>
    %c0_2 = arith.constant 0 : index
    %c0_3 = arith.constant 0 : index
    %3 = vector.load %arg3[%c0_2, %c0_3] : memref<64x512xbf16, #tpu.memory_space<vmem>>, vector<64x512xbf16>
    %cst = arith.constant dense<0.000000e+00> : vector<8x512xf32>
    %4 = tpu.matmul %2, %3, %cst {dimension_numbers = #tpu.dot_dimension_numbers<[1], [0], [0], [1], [0, 0, 1, 1], [], []>} : vector<8x64xbf16>, vector<64x512xbf16>, vector<8x512xf32> -> vector<8x512xf32>
    %c0_4 = arith.constant 0 : index
    %c0_5 = arith.constant 0 : index
    %5 = vector.load %arg4[%c0_4, %c0_5] : memref<1x512xf32, #tpu.memory_space<vmem>>, vector<1x512xf32>
    %6 = vector.broadcast %5 : vector<1x512xf32> to vector<8x512xf32>
    %7 = arith.addf %4, %6 : vector<8x512xf32>
    %cst_6 = arith.constant 0.000000e+00 : f32
    %8 = vector.broadcast %cst_6 : f32 to vector<8x512xf32>
    %9 = arith.maximumf %7, %8 : vector<8x512xf32>
    %10 = tpu.iota {dimensions = array<i32: 0>} : vector<8x512xi32>
    %11 = tpu.iota {dimensions = array<i32: 1>} : vector<8x512xi32>
    %c-1640531535_i32 = arith.constant -1640531535 : i32
    %12 = vector.broadcast %c-1640531535_i32 : i32 to vector<8x512xi32>
    %13 = arith.muli %10, %12 : vector<8x512xi32>
    %c-2048144777_i32 = arith.constant -2048144777 : i32
    %14 = vector.broadcast %c-2048144777_i32 : i32 to vector<8x512xi32>
    %15 = arith.muli %11, %14 : vector<8x512xi32>
    %16 = arith.xori %13, %15 : vector<8x512xi32>
    %17 = vector.broadcast %0 : i32 to vector<8x512xi32>
    %18 = arith.addi %16, %17 : vector<8x512xi32>
    %c668265263_i32 = arith.constant 668265263 : i32
    %19 = arith.muli %arg0, %c668265263_i32 : i32
    %20 = vector.broadcast %19 : i32 to vector<8x512xi32>
    %21 = arith.addi %18, %20 : vector<8x512xi32>
    %c1_i32 = arith.constant 1 : i32
    %c374761393_i32 = arith.constant 374761393 : i32
    %22 = arith.muli %c1_i32, %c374761393_i32 : i32
    %23 = vector.broadcast %22 : i32 to vector<8x512xi32>
    %24 = arith.addi %21, %23 : vector<8x512xi32>
    %c16_i32 = arith.constant 16 : i32
    %25 = vector.broadcast %c16_i32 : i32 to vector<8x512xi32>
    %26 = arith.shrui %24, %25 : vector<8x512xi32>
    %27 = arith.xori %24, %26 : vector<8x512xi32>
    %c-2048144789_i32 = arith.constant -2048144789 : i32
    %28 = vector.broadcast %c-2048144789_i32 : i32 to vector<8x512xi32>
    %29 = arith.muli %27, %28 : vector<8x512xi32>
    %c13_i32 = arith.constant 13 : i32
    %30 = vector.broadcast %c13_i32 : i32 to vector<8x512xi32>
    %31 = arith.shrui %29, %30 : vector<8x512xi32>
    %32 = arith.xori %29, %31 : vector<8x512xi32>
    %c-1028477387_i32 = arith.constant -1028477387 : i32
    %33 = vector.broadcast %c-1028477387_i32 : i32 to vector<8x512xi32>
    %34 = arith.muli %32, %33 : vector<8x512xi32>
    %c16_i32_7 = arith.constant 16 : i32
    %35 = vector.broadcast %c16_i32_7 : i32 to vector<8x512xi32>
    %36 = arith.shrui %34, %35 : vector<8x512xi32>
    %37 = arith.xori %34, %36 : vector<8x512xi32>
    %c429496729_i32 = arith.constant 429496729 : i32
    %38 = vector.broadcast %c429496729_i32 : i32 to vector<8x512xi32>
    %39 = arith.cmpi uge, %37, %38 : vector<8x512xi32>
    %cst_8 = arith.constant 0.000000e+00 : f32
    %40 = vector.broadcast %cst_8 : f32 to vector<8x512xf32>
    %41 = arith.select %39, %9, %40 : vector<8x512xi1>, vector<8x512xf32>
    %42 = arith.truncf %41 : vector<8x512xf32> to vector<8x512xbf16>
    %c0_9 = arith.constant 0 : index
    %c0_10 = arith.constant 0 : index
    %43 = vector.load %arg5[%c0_9, %c0_10] : memref<512x512xbf16, #tpu.memory_space<vmem>>, vector<512x512xbf16>
    %cst_11 = arith.constant dense<0.000000e+00> : vector<8x512xf32>
    %44 = tpu.matmul %42, %43, %cst_11 {dimension_numbers = #tpu.dot_dimension_numbers<[1], [0], [0], [1], [0, 0, 1, 1], [], []>} : vector<8x512xbf16>, vector<512x512xbf16>, vector<8x512xf32> -> vector<8x512xf32>
    %c0_12 = arith.constant 0 : index
    %c0_13 = arith.constant 0 : index
    %45 = vector.load %arg6[%c0_12, %c0_13] : memref<1x512xf32, #tpu.memory_space<vmem>>, vector<1x512xf32>
    %46 = vector.broadcast %45 : vector<1x512xf32> to vector<8x512xf32>
    %47 = arith.addf %44, %46 : vector<8x512xf32>
    %cst_14 = arith.constant 0.000000e+00 : f32
    %48 = vector.broadcast %cst_14 : f32 to vector<8x512xf32>
    %49 = arith.maximumf %47, %48 : vector<8x512xf32>
    %50 = tpu.iota {dimensions = array<i32: 0>} : vector<8x512xi32>
    %51 = tpu.iota {dimensions = array<i32: 1>} : vector<8x512xi32>
    %c-1640531535_i32_15 = arith.constant -1640531535 : i32
    %52 = vector.broadcast %c-1640531535_i32_15 : i32 to vector<8x512xi32>
    %53 = arith.muli %50, %52 : vector<8x512xi32>
    %c-2048144777_i32_16 = arith.constant -2048144777 : i32
    %54 = vector.broadcast %c-2048144777_i32_16 : i32 to vector<8x512xi32>
    %55 = arith.muli %51, %54 : vector<8x512xi32>
    %56 = arith.xori %53, %55 : vector<8x512xi32>
    %57 = vector.broadcast %0 : i32 to vector<8x512xi32>
    %58 = arith.addi %56, %57 : vector<8x512xi32>
    %c668265263_i32_17 = arith.constant 668265263 : i32
    %59 = arith.muli %arg0, %c668265263_i32_17 : i32
    %60 = vector.broadcast %59 : i32 to vector<8x512xi32>
    %61 = arith.addi %58, %60 : vector<8x512xi32>
    %c2_i32 = arith.constant 2 : i32
    %c374761393_i32_18 = arith.constant 374761393 : i32
    %62 = arith.muli %c2_i32, %c374761393_i32_18 : i32
    %63 = vector.broadcast %62 : i32 to vector<8x512xi32>
    %64 = arith.addi %61, %63 : vector<8x512xi32>
    %c16_i32_19 = arith.constant 16 : i32
    %65 = vector.broadcast %c16_i32_19 : i32 to vector<8x512xi32>
    %66 = arith.shrui %64, %65 : vector<8x512xi32>
    %67 = arith.xori %64, %66 : vector<8x512xi32>
    %c-2048144789_i32_20 = arith.constant -2048144789 : i32
    %68 = vector.broadcast %c-2048144789_i32_20 : i32 to vector<8x512xi32>
    %69 = arith.muli %67, %68 : vector<8x512xi32>
    %c13_i32_21 = arith.constant 13 : i32
    %70 = vector.broadcast %c13_i32_21 : i32 to vector<8x512xi32>
    %71 = arith.shrui %69, %70 : vector<8x512xi32>
    %72 = arith.xori %69, %71 : vector<8x512xi32>
    %c-1028477387_i32_22 = arith.constant -1028477387 : i32
    %73 = vector.broadcast %c-1028477387_i32_22 : i32 to vector<8x512xi32>
    %74 = arith.muli %72, %73 : vector<8x512xi32>
    %c16_i32_23 = arith.constant 16 : i32
    %75 = vector.broadcast %c16_i32_23 : i32 to vector<8x512xi32>
    %76 = arith.shrui %74, %75 : vector<8x512xi32>
    %77 = arith.xori %74, %76 : vector<8x512xi32>
    %c429496729_i32_24 = arith.constant 429496729 : i32
    %78 = vector.broadcast %c429496729_i32_24 : i32 to vector<8x512xi32>
    %79 = arith.cmpi uge, %77, %78 : vector<8x512xi32>
    %cst_25 = arith.constant 0.000000e+00 : f32
    %80 = vector.broadcast %cst_25 : f32 to vector<8x512xf32>
    %81 = arith.select %79, %49, %80 : vector<8x512xi1>, vector<8x512xf32>
    %82 = arith.truncf %81 : vector<8x512xf32> to vector<8x512xbf16>
    %c0_26 = arith.constant 0 : index
    %c0_27 = arith.constant 0 : index
    %83 = vector.load %arg7[%c0_26, %c0_27] : memref<512x128xbf16, #tpu.memory_space<vmem>>, vector<512x128xbf16>
    %cst_28 = arith.constant dense<0.000000e+00> : vector<8x128xf32>
    %84 = tpu.matmul %82, %83, %cst_28 {dimension_numbers = #tpu.dot_dimension_numbers<[1], [0], [0], [1], [0, 0, 1, 1], [], []>} : vector<8x512xbf16>, vector<512x128xbf16>, vector<8x128xf32> -> vector<8x128xf32>
    %c0_29 = arith.constant 0 : index
    %c0_30 = arith.constant 0 : index
    %85 = vector.load %arg8[%c0_29, %c0_30] : memref<1x128xf32, #tpu.memory_space<vmem>>, vector<1x128xf32>
    %86 = vector.broadcast %85 : vector<1x128xf32> to vector<8x128xf32>
    %87 = arith.addf %84, %86 : vector<8x128xf32>
    %c0_31 = arith.constant 0 : index
    %c0_32 = arith.constant 0 : index
    %88 = vector.load %arg9[%c0_31, %c0_32] : memref<8x128xf32, #tpu.memory_space<vmem>>, vector<8x128xf32>
    tpu.vector_store %arg9[%c0_31, %c0_32], %87 {strides = array<i32>} : memref<8x128xf32, #tpu.memory_space<vmem>>, vector<8x128xf32>,
    return
  }
  func.func @transform_0(%arg0: i32, %arg1: memref<1xi32, #tpu.memory_space<smem>>) -> (i32, i32) {
    %c0_i32 = arith.constant 0 : i32
    %c0_i32_0 = arith.constant 0 : i32
    return %arg0, %c0_i32 : i32, i32
  }
  func.func @transform_1(%arg0: i32, %arg1: memref<1xi32, #tpu.memory_space<smem>>) -> (i32, i32) {
    %c0_i32 = arith.constant 0 : i32
    %c0_i32_0 = arith.constant 0 : i32
    %c0_i32_1 = arith.constant 0 : i32
    return %c0_i32, %c0_i32_0 : i32, i32
  }
  func.func @transform_2(%arg0: i32, %arg1: memref<1xi32, #tpu.memory_space<smem>>) -> (i32, i32) {
    %c0_i32 = arith.constant 0 : i32
    %c0_i32_0 = arith.constant 0 : i32
    %c0_i32_1 = arith.constant 0 : i32
    return %c0_i32, %c0_i32_0 : i32, i32
  }
  func.func @transform_3(%arg0: i32, %arg1: memref<1xi32, #tpu.memory_space<smem>>) -> (i32, i32) {
    %c0_i32 = arith.constant 0 : i32
    %c0_i32_0 = arith.constant 0 : i32
    %c0_i32_1 = arith.constant 0 : i32
    return %c0_i32, %c0_i32_0 : i32, i32
  }
  func.func @transform_4(%arg0: i32, %arg1: memref<1xi32, #tpu.memory_space<smem>>) -> (i32, i32) {
    %c0_i32 = arith.constant 0 : i32
    %c0_i32_0 = arith.constant 0 : i32
    %c0_i32_1 = arith.constant 0 : i32
    return %c0_i32, %c0_i32_0 : i32, i32
  }
  func.func @transform_5(%arg0: i32, %arg1: memref<1xi32, #tpu.memory_space<smem>>) -> (i32, i32) {
    %c0_i32 = arith.constant 0 : i32
    %c0_i32_0 = arith.constant 0 : i32
    %c0_i32_1 = arith.constant 0 : i32
    return %c0_i32, %c0_i32_0 : i32, i32
  }
  func.func @transform_6(%arg0: i32, %arg1: memref<1xi32, #tpu.memory_space<smem>>) -> (i32, i32) {
    %c0_i32 = arith.constant 0 : i32
    %c0_i32_0 = arith.constant 0 : i32
    %c0_i32_1 = arith.constant 0 : i32
    return %c0_i32, %c0_i32_0 : i32, i32
  }
  func.func @transform_7(%arg0: i32, %arg1: memref<1xi32, #tpu.memory_space<smem>>) -> (i32, i32) {
    %c0_i32 = arith.constant 0 : i32
    %c0_i32_0 = arith.constant 0 : i32
    return %arg0, %c0_i32 : i32, i32
  }
}

</mosaic_0001>

<bundles_post_ra>
// kernel: tpu_custom_call.1
= control target key start
LH: loop header
LB: loop body
LE: loop exit
PB: predicated region body
PF: predicated region fallthrough
CT: control target
= control target key end

     0   :  { %14 = vsyncpa [#allocation5], 0  ;;  %s2584_s0 = inlined_call_operand.<no memory space> [shape: s32[1], index: 0, kind: input, shape index: {}]   ;;  %s2585_s1 = inlined_call_operand.hbm [shape: f32[8,64], index: 1, kind: input, shape index: {}]   ;;  %s2586_s2 = inlined_call_operand.hbm [shape: bf16[64,512], index: 2, kind: input, shape index: {}]   ;;  %s2587_s3 = inlined_call_operand.vmem [shape: f32[1,512], index: 3, kind: input, shape index: {}]   ;;  %s2588_s4 = inlined_call_operand.hbm [shape: bf16[512,512], index: 4, kind: input, shape index: {}]   ;;  %s2589_s5 = inlined_call_operand.vmem [shape: f32[1,512], index: 5, kind: input, shape index: {}]   ;;  %s2590_s6 = inlined_call_operand.hbm [shape: bf16[512,128], index: 6, kind: input, shape index: {}]   ;;  %s2591_s7 = inlined_call_operand.vmem [shape: f32[1,128], index: 7, kind: input, shape index: {}]   ;;  %s2592_s8 = inlined_call_operand.hbm [shape: f32[8,128], index: 8, kind: output, shape index: {}]  }
   0x1   :  { %15 = vsyncpa [#allocation8], 0 }
   0x2   :  { %16 = vsyncpa [#allocation11], 0 }
   0x3   :  { %17 = vsyncpa [#allocation6], 0  ;;  %s2383_s27 = smov [#allocation7]   ;;  %s2265_s9 = scalar_lea.hbm %s2586_s2, 2048 }
   0x4   :  { %s33_s28 = sshll.u32 %s2383_s27, 4  ;;  %p2266_p0 = scmp.ne.s32.totalorder %s2586_s2, %s2265_s9  ;;  %s34_s28 = int_to_ptr.vmem [resolvable:$true] %s33_s28 }
   0x5   :  { %p2269_p1 = scmp.lt.u32.totalorder %s2265_s9, %s2586_s2 }
   0x7   :  { %p2271_p2 = pnand %p2269_p1, %p2266_p0 }
   0x9   :  { %2274 = shalt.err (!%p2271_p2)
}
   0xa   :  { %s2275_s14 = scalar_lea.vmem %s34_s28, 2048  ;;  %p2280_p4 = scmp.lt.s32.totalorder %s34_s28, %s34_s28 }
   0xb   :  { %p2276_p3 = scmp.ne.s32.totalorder %s34_s28, %s2275_s14  ;;  %p2281_p5 = scmp.lt.s32.totalorder %s2275_s14, %s2275_s14 }
   0xd   :  { %p2282_p6 = por %p2281_p5, %p2280_p4 }
   0xf   :  { %p2283_p7 = pnand %p2282_p6, %p2276_p3 }
  0x11   :  { %2286 = shalt.err (!%p2283_p7)
}
  0x12   :  { %s2384_s15 = smov 256   ;;  %s2385_s16 = smov 16  }
  0x13   :  { %39 = dma.hbm_to_vmem [thread:$0]  %s2586_s2, 2048, %s34_s28, [#allocation8], %s2384_s15, %s2384_s15, %s2385_s16  }
  0x14   :  { %s2386_s19 = smov [#allocation4]   ;;  %s2387_s21 = smov [#allocation9]  }
  0x15   :  { %s24_s20 = sshll.u32 %s2386_s19, 4  ;;  %s47_s22 = sshll.u32 %s2387_s21, 4  ;;  %s25_s20 = int_to_ptr.vmem [resolvable:$true] %s24_s20  ;;  %s48_s22 = int_to_ptr.vmem [resolvable:$true] %s47_s22 }
  0x16   :  { %s2287_s25 = scalar_lea.hbm %s2585_s1, 128 }
  0x17   :  { %p2288_p8 = scmp.ne.s32.totalorder %s2585_s1, %s2287_s25  ;;  %p2291_p9 = scmp.lt.u32.totalorder %s2287_s25, %s2585_s1 }
  0x19   :  { %p2293_p10 = pnand %p2291_p9, %p2288_p8 }
  0x1b   :  { %2296 = shalt.err (!%p2293_p10)
}
  0x1c   :  { %s2297_s2 = scalar_lea.vmem %s25_s20, 128  ;;  %p2302_p12 = scmp.lt.s32.totalorder %s25_s20, %s25_s20 }
  0x1d   :  { %p2298_p11 = scmp.ne.s32.totalorder %s25_s20, %s2297_s2  ;;  %p2303_p13 = scmp.lt.s32.totalorder %s2297_s2, %s2297_s2 }
  0x1f   :  { %p2304_p0 = por %p2303_p13, %p2302_p12 }
  0x21   :  { %p2305_p1 = pnand %p2304_p0, %p2298_p11 }
  0x23   :  { %2308 = shalt.err (!%p2305_p1)
}
  0x24   :  { %27 = dma.hbm_to_vmem [thread:$0]  %s2585_s1, 128, %s25_s20, [#allocation5]  }
  0x25   :  { %s2309_s12 = scalar_lea.hbm %s2588_s4, 16384 }
  0x26   :  { %p2310_p2 = scmp.ne.s32.totalorder %s2588_s4, %s2309_s12  ;;  %p2313_p3 = scmp.lt.u32.totalorder %s2309_s12, %s2588_s4 }
  0x28   :  { %p2315_p4 = pnand %p2313_p3, %p2310_p2 }
  0x2a   :  { %2318 = shalt.err (!%p2315_p4)
}
  0x2b   :  { %s2319_s19 = scalar_lea.vmem %s48_s22, 16384  ;;  %p2324_p6 = scmp.lt.s32.totalorder %s48_s22, %s48_s22 }
  0x2c   :  { %p2320_p5 = scmp.ne.s32.totalorder %s48_s22, %s2319_s19  ;;  %p2325_p7 = scmp.lt.s32.totalorder %s2319_s19, %s2319_s19 }
  0x2e   :  { %p2326_p8 = por %p2325_p7, %p2324_p6 }
  0x30   :  { %p2327_p9 = pnand %p2326_p8, %p2320_p5 }
  0x32   :  { %2330 = shalt.err (!%p2327_p9)
}
  0x33   :  { %53 = dma.hbm_to_vmem [thread:$0]  %s2588_s4, 16384, %s48_s22, [#allocation8], %s2384_s15, %s2384_s15, %s2385_s16  }
  0x34   :  { %s2388_s21 = smov [#allocation10]   ;;  %s2331_s26 = scalar_lea.hbm %s2590_s6, 4096 }
  0x35   :  { %s61_s23 = sshll.u32 %s2388_s21, 4  ;;  %p2332_p10 = scmp.ne.s32.totalorder %s2590_s6, %s2331_s26  ;;  %s62_s23 = int_to_ptr.vmem [resolvable:$true] %s61_s23 }
  0x36   :  { %p2335_p11 = scmp.lt.u32.totalorder %s2331_s26, %s2590_s6 }
  0x38   :  { %p2337_p12 = pnand %p2335_p11, %p2332_p10 }
  0x3a   :  { %2340 = shalt.err (!%p2337_p12)
}
  0x3b   :  { %s2341_s28 = scalar_lea.vmem %s62_s23, 4096  ;;  %p2346_p0 = scmp.lt.s32.totalorder %s62_s23, %s62_s23 }
  0x3c   :  { %p2342_p13 = scmp.ne.s32.totalorder %s62_s23, %s2341_s28  ;;  %p2347_p1 = scmp.lt.s32.totalorder %s2341_s28, %s2341_s28 }
  0x3e   :  { %p2348_p2 = por %p2347_p1, %p2346_p0 }
  0x40   :  { %p2349_p3 = pnand %p2348_p2, %p2342_p13 }
  0x42   :  { %2352 = shalt.err (!%p2349_p3)
}
  0x43   :  { %s2389_s4 = smov 64   ;;  %s2390_s15 = smov 4  }
  0x44   :  { %67 = dma.hbm_to_vmem [thread:$0]  %s2590_s6, 4096, %s62_s23, [#allocation11], %s2389_s4, %s2389_s4, %s2390_s15  }
  0x45   :  { %2375 = dma.done.wait [#allocation5], 128  }
  0x46   :  { %2376 = vsyncadd [#allocation5], 4294967168 }
  0x47   :  { %2377 = dma.done.wait [#allocation8], 18432  }
  0x48   :  { %2378 = vsyncadd [#allocation8], 4294948864 }
  0x49   :  { %2379 = dma.done.wait [#allocation11], 4096  }
  0x4a   :  { %2380 = vsyncadd [#allocation11], 4294963200  ;;  %v2391_v0 = vmov 0   ;;  %v2017_v1 = vld [vmem:[#allocation7 + $0x4] ss:$16 sps:$4 sm:$0xff]   ;;  %v84_v14 = vld [vmem:[#allocation4] sm:$0xff] }
  0x4b   :  { %240 = vmatprep.mubr.bf16.mxu0 %v2391_v0  ;;  %281 = vmatprep.mubr.bf16.mxu1 %v2391_v0  ;;  %v2019_v2 = vld [vmem:[#allocation7] ss:$16 sps:$4 sm:$0xff]   ;;  %v2020_v3 = vld [vmem:[#allocation7 + $0x24] ss:$16 sps:$4 sm:$0xff]   ;;  %v2029_v7 = vld [vmem:[#allocation7 + $0xc] ss:$16 sps:$4 sm:$0xff]   ;;  %v85_v17 = vpack.c.bf16 %v84_v14, %v84_v14 }
  0x4c   :  { %208 = vmatprep.subr.bf16.mxu0 %v2017_v1  ;;  %v2022_v4 = vld [vmem:[#allocation7 + $0x20] ss:$16 sps:$4 sm:$0xff]   ;;  %v2023_v5 = vld [vmem:[#allocation7 + $0x44] ss:$16 sps:$4 sm:$0xff]   ;;  %v2031_v8 = vld [vmem:[#allocation7 + $0x8] ss:$16 sps:$4 sm:$0xff]   ;;  %249 = vmatprep.subr.bf16.mxu1 %v2029_v7 }
  0x4d   :  { %209 = vmatpush1.bf16.msra.mxu0 %v2019_v2  ;;  %v2025_v6 = vld [vmem:[#allocation7 + $0x40] ss:$16 sps:$4 sm:$0xff]   ;;  %v2032_v9 = vld [vmem:[#allocation7 + $0x2c] ss:$16 sps:$4 sm:$0xff]   ;;  %v2026_v10 = vld [vmem:[#allocation7 + $0x64] ss:$16 sps:$4 sm:$0xff]   ;;  %250 = vmatpush1.bf16.msra.mxu1 %v2031_v8 }
  0x4e   :  { %210 = vmatprep.subr.bf16.mxu0 %v2020_v3  ;;  %v2034_v11 = vld [vmem:[#allocation7 + $0x28] ss:$16 sps:$4 sm:$0xff]   ;;  %v2028_v12 = vld [vmem:[#allocation7 + $0x60] ss:$16 sps:$4 sm:$0xff]   ;;  %251 = vmatprep.subr.bf16.mxu1 %v2032_v9  ;;  %v2035_v13 = vld [vmem:[#allocation7 + $0x4c] ss:$16 sps:$4 sm:$0xff]  }
  0x4f   :  { %v2043_v15 = vld [vmem:[#allocation9 + $0x4] ss:$16 sps:$4 sm:$0xff]   ;;  %v2037_v16 = vld [vmem:[#allocation7 + $0x48] ss:$16 sps:$4 sm:$0xff]   ;;  %v2038_v18 = vld [vmem:[#allocation7 + $0x6c] ss:$16 sps:$4 sm:$0xff]  }
  0x50   :  { %vm204_vm0 = vcmask 523264   ;;  %v2041_v19 = vld [vmem:[#allocation9] ss:$16 sps:$4 sm:$0xff]   ;;  %v2049_v20 = vld [vmem:[#allocation9 + $0x24] ss:$16 sps:$4 sm:$0xff]   ;;  %s2392_s13 = smov [#allocation12]  }
  0x51   :  { %211 = vmatpush1.bf16.msra.mxu0 %v2022_v4  ;;  %252 = vmatpush1.bf16.msra.mxu1 %v2034_v11  ;;  %v2040_v21 = vld [vmem:[#allocation7 + $0x68] ss:$16 sps:$4 sm:$0xff]   ;;  %v2046_v22 = vld [vmem:[#allocation9 + $0xc] ss:$16 sps:$4 sm:$0xff]   ;;  %v2047_v23 = vld [vmem:[#allocation9 + $0x20] ss:$16 sps:$4 sm:$0xff]  }
  0x52   :  { %212 = vmatprep.subr.bf16.mxu0 %v2023_v5  ;;  %253 = vmatprep.subr.bf16.mxu1 %v2035_v13  ;;  %v2055_v24 = vld [vmem:[#allocation9 + $0x44] ss:$16 sps:$4 sm:$0xff]   ;;  %v2044_v25 = vld [vmem:[#allocation9 + $0x8] ss:$16 sps:$4 sm:$0xff]   ;;  %v2052_v26 = vld [vmem:[#allocation9 + $0x2c] ss:$16 sps:$4 sm:$0xff]  }
  0x53   :  { %v2053_v27 = vld [vmem:[#allocation9 + $0x40] ss:$16 sps:$4 sm:$0xff]   ;;  %v2061_v28 = vld [vmem:[#allocation9 + $0x64] ss:$16 sps:$4 sm:$0xff]   ;;  %v2050_v29 = vld [vmem:[#allocation9 + $0x28] ss:$16 sps:$4 sm:$0xff]  }
  0x54   :  { %v2058_v30 = vld [vmem:[#allocation9 + $0x4c] ss:$16 sps:$4 sm:$0xff]   ;;  %v2059_v31 = vld [vmem:[#allocation9 + $0x60] ss:$16 sps:$4 sm:$0xff]   ;;  %v2067_v32 = vld [vmem:[#allocation9 + $0x84] ss:$16 sps:$4 sm:$0xff]  }
  0x55   :  { %213 = vmatpush1.bf16.msra.mxu0 %v2025_v6  ;;  %254 = vmatpush1.bf16.msra.mxu1 %v2037_v16  ;;  %v2056_v33 = vld [vmem:[#allocation9 + $0x48] ss:$16 sps:$4 sm:$0xff]   ;;  %v2064_v34 = vld [vmem:[#allocation9 + $0x6c] ss:$16 sps:$4 sm:$0xff]   ;;  %v2065_v35 = vld [vmem:[#allocation9 + $0x80] ss:$16 sps:$4 sm:$0xff]  }
  0x56   :  { %214 = vmatprep.subr.bf16.mxu0 %v2026_v10  ;;  %255 = vmatprep.subr.bf16.mxu1 %v2038_v18  ;;  %v2073_v36 = vld [vmem:[#allocation9 + $0xa4] ss:$16 sps:$4 sm:$0xff]   ;;  %v2062_v37 = vld [vmem:[#allocation9 + $0x68] ss:$16 sps:$4 sm:$0xff]   ;;  %v2070_v38 = vld [vmem:[#allocation9 + $0x8c] ss:$16 sps:$4 sm:$0xff]  }
  0x57   :  { %v2071_v39 = vld [vmem:[#allocation9 + $0xa0] ss:$16 sps:$4 sm:$0xff]   ;;  %v2079_v40 = vld [vmem:[#allocation9 + $0xc4] ss:$16 sps:$4 sm:$0xff]   ;;  %v2068_v41 = vld [vmem:[#allocation9 + $0x88] ss:$16 sps:$4 sm:$0xff]  }
  0x58   :  { %v2076_v42 = vld [vmem:[#allocation9 + $0xac] ss:$16 sps:$4 sm:$0xff]   ;;  %v2077_v43 = vld [vmem:[#allocation9 + $0xc0] ss:$16 sps:$4 sm:$0xff]   ;;  %v2085_v44 = vld [vmem:[#allocation9 + $0xe4] ss:$16 sps:$4 sm:$0xff]  }
  0x59   :  { %215 = vmatpush1.bf16.msra.mxu0 %v2028_v12  ;;  %256 = vmatpush1.bf16.msra.mxu1 %v2040_v21  ;;  %v2074_v45 = vld [vmem:[#allocation9 + $0xa8] ss:$16 sps:$4 sm:$0xff]   ;;  %v2082_v46 = vld [vmem:[#allocation9 + $0xcc] ss:$16 sps:$4 sm:$0xff]   ;;  %v2083_v47 = vld [vmem:[#allocation9 + $0xe0] ss:$16 sps:$4 sm:$0xff]   ;;  %v104_v21 = vlaneseq }
  0x5a   :  { %1159 = vmatprep.subr.bf16.mxu0 %v2043_v15  ;;  %1241 = vmatprep.subr.bf16.mxu1 %v2046_v22  ;;  %v2091_v48 = vld [vmem:[#allocation9 + $0x104] ss:$16 sps:$4 sm:$0xff]   ;;  %v2080_v49 = vld [vmem:[#allocation9 + $0xc8] ss:$16 sps:$4 sm:$0xff]   ;;  %v2088_v50 = vld [vmem:[#allocation9 + $0xec] ss:$16 sps:$4 sm:$0xff]  }
  0x5b   :  { %v2086_v51 = vld [vmem:[#allocation9 + $0xe8] ss:$16 sps:$4 sm:$0xff]   ;;  %v2089_v52 = vld [vmem:[#allocation9 + $0x100] ss:$16 sps:$4 sm:$0xff]   ;;  %v2094_v53 = vld [vmem:[#allocation9 + $0x10c] ss:$16 sps:$4 sm:$0xff]  }
  0x5c   :  { %1752 = vmatmul.mubr.msk.bf16.vlgmr.msra.gmra.mrb[0].mxu0 %vm204_vm0, %v85_v17  ;;  %1753 = vmatmul.mubr.msk.bf16.vlgmr.msra.gmra.mrb[0].mxu1 %vm204_vm0, %v85_v17  ;;  %v2097_v54 = vld [vmem:[#allocation9 + $0x124] ss:$16 sps:$4 sm:$0xff]   ;;  %v2095_v55 = vld [vmem:[#allocation9 + $0x120] ss:$16 sps:$4 sm:$0xff]   ;;  %v2092_v57 = vld [vmem:[#allocation9 + $0x108] ss:$16 sps:$4 sm:$0xff]  }
  0x5d   :  { %1160 = vmatpush1.bf16.msra.mxu0 %v2041_v19  ;;  %1242 = vmatpush1.bf16.msra.mxu1 %v2044_v25  ;;  %v2103_v56 = vld [vmem:[#allocation9 + $0x144] ss:$16 sps:$4 sm:$0xff]   ;;  %v2100_v58 = vld [vmem:[#allocation9 + $0x12c] ss:$16 sps:$4 sm:$0xff]   ;;  %v2101_v59 = vld [vmem:[#allocation9 + $0x140] ss:$16 sps:$4 sm:$0xff]  }
  0x5e   :  { %1161 = vmatprep.subr.bf16.mxu0 %v2049_v20  ;;  %1243 = vmatprep.subr.bf16.mxu1 %v2052_v26  ;;  %v2109_v60 = vld [vmem:[#allocation9 + $0x164] ss:$16 sps:$4 sm:$0xff]   ;;  %v2098_v61 = vld [vmem:[#allocation9 + $0x128] ss:$16 sps:$4 sm:$0xff]   ;;  %v2106_v62 = vld [vmem:[#allocation9 + $0x14c] ss:$16 sps:$4 sm:$0xff]  }
  0x5f   :  { %v2107_v63 = vld [vmem:[#allocation9 + $0x160] ss:$16 sps:$4 sm:$0xff]   ;;  %v2115_v0 = vld [vmem:[#allocation9 + $0x184] ss:$16 sps:$4 sm:$0xff]   ;;  %v2104_v1 = vld [vmem:[#allocation9 + $0x148] ss:$16 sps:$4 sm:$0xff]  }
  0x60   :  { %v2112_v2 = vld [vmem:[#allocation9 + $0x16c] ss:$16 sps:$4 sm:$0xff]   ;;  %v2113_v3 = vld [vmem:[#allocation9 + $0x180] ss:$16 sps:$4 sm:$0xff]   ;;  %v2121_v4 = vld [vmem:[#allocation9 + $0x1a4] ss:$16 sps:$4 sm:$0xff]  }
  0x61   :  { %1162 = vmatpush1.bf16.msra.mxu0 %v2047_v23  ;;  %1244 = vmatpush1.bf16.msra.mxu1 %v2050_v29  ;;  %v2110_v5 = vld [vmem:[#allocation9 + $0x168] ss:$16 sps:$4 sm:$0xff]   ;;  %v2118_v6 = vld [vmem:[#allocation9 + $0x18c] ss:$16 sps:$4 sm:$0xff]   ;;  %v2119_v7 = vld [vmem:[#allocation9 + $0x1a0] ss:$16 sps:$4 sm:$0xff]  }
  0x62   :  { %1163 = vmatprep.subr.bf16.mxu0 %v2055_v24  ;;  %1245 = vmatprep.subr.bf16.mxu1 %v2058_v30  ;;  %v2116_v8 = vld [vmem:[#allocation9 + $0x188] ss:$16 sps:$4 sm:$0xff]   ;;  %v2124_v9 = vld [vmem:[#allocation9 + $0x1ac] ss:$16 sps:$4 sm:$0xff]   ;;  %v2127_v11 = vld [vmem:[#allocation9 + $0x1c4] ss:$16 sps:$4 sm:$0xff]   ;;  %v2508_v30 = vstv %s2584_s0 }
  0x63   :  { %v2122_v10 = vld [vmem:[#allocation9 + $0x1a8] ss:$16 sps:$4 sm:$0xff]   ;;  %v2130_v12 = vld [vmem:[#allocation9 + $0x1cc] ss:$16 sps:$4 sm:$0xff]   ;;  %v2125_v13 = vld [vmem:[#allocation9 + $0x1c0] ss:$16 sps:$4 sm:$0xff]  }
  0x64   :  { %v2128_v14 = vld [vmem:[#allocation9 + $0x1c8] ss:$16 sps:$4 sm:$0xff]   ;;  %v2133_v15 = vld [vmem:[#allocation9 + $0x1e4] ss:$16 sps:$4 sm:$0xff]   ;;  %v2136_v16 = vld [vmem:[#allocation9 + $0x1ec] ss:$16 sps:$4 sm:$0xff]  }
  0x65   :  { %1164 = vmatpush1.bf16.msra.mxu0 %v2053_v27  ;;  %1246 = vmatpush1.bf16.msra.mxu1 %v2056_v33  ;;  %v2131_v17 = vld [vmem:[#allocation9 + $0x1e0] ss:$16 sps:$4 sm:$0xff]   ;;  %v2134_v18 = vld [vmem:[#allocation9 + $0x1e8] ss:$16 sps:$4 sm:$0xff]   ;;  %v2139_v19 = vld [vmem:[#allocation9 + $0x204] ss:$16 sps:$4 sm:$0xff]  }
  0x66   :  { %1165 = vmatprep.subr.bf16.mxu0 %v2061_v28  ;;  %1247 = vmatprep.subr.bf16.mxu1 %v2064_v34  ;;  %v2142_v20 = vld [vmem:[#allocation9 + $0x20c] ss:$16 sps:$4 sm:$0xff]   ;;  %v2494_v22 = vand.u32 127, %v104_v21  ;;  %v2496_v23 = vshrl.u32 %v104_v21, 7  ;;  %s1725_s14 = sshll.u32 %s2392_s13, 4  ;;  %s1726_s14 = int_to_ptr.vmem [resolvable:$true] %s1725_s14 }
  0x67   :  { %v2148_v21 = vld [vmem:[#allocation9 + $0x22c] ss:$16 sps:$4 sm:$0xff]   ;;  %s2353_s17 = scalar_lea.vmem %s1726_s14, 128  ;;  %p2358_p5 = scmp.lt.s32.totalorder %s1726_s14, %s1726_s14 }
  0x68   :  { %v298_v24 = vadd.s32 128, %v2494_v22  ;;  %v2500_v25 = vmul.u32 2654435761, %v2496_v23  ;;  %v302_v27 = vmul.u32 2246822519, %v2494_v22  ;;  %v300_v29 = vadd.s32 384, %v2494_v22  ;;  %p2354_p4 = scmp.ne.s32.totalorder %s1726_s14, %s2353_s17  ;;  %p2359_p6 = scmp.lt.s32.totalorder %s2353_s17, %s2353_s17 }
  0x69   :  { %1166 = vmatpush1.bf16.msra.mxu0 %v2059_v31  ;;  %1248 = vmatpush1.bf16.msra.mxu1 %v2062_v37 }
  0x6a   :  { %1167 = vmatprep.subr.bf16.mxu0 %v2067_v32  ;;  %1249 = vmatprep.subr.bf16.mxu1 %v2070_v38  ;;  %v303_v26 = vmul.u32 2246822519, %v298_v24  ;;  %v306_v31 = vxor.u32 %v302_v27, %v2500_v25  ;;  %v305_v33 = vmul.u32 2246822519, %v300_v29  ;;  %p2360_p7 = por %p2359_p6, %p2358_p5 }
  0x6c   :  { %v307_v28 = vxor.u32 %v303_v26, %v2500_v25  ;;  %v2515_v34 = vadd.s32 %v2508_v30, %v306_v31  ;;  %v2146_v31 = vld [vmem:[#allocation9 + $0x228] ss:$16 sps:$4 sm:$0xff]   ;;  %p2361_p8 = pnand %p2360_p7, %p2354_p4 }
  0x6d   :  { %1168 = vmatpush1.bf16.msra.mxu0 %v2065_v35  ;;  %1250 = vmatpush1.bf16.msra.mxu1 %v2068_v41 }
  0x6e   :  { %1169 = vmatprep.subr.bf16.mxu0 %v2073_v36  ;;  %1251 = vmatprep.subr.bf16.mxu1 %v2076_v42  ;;  %v2512_v32 = vadd.s32 %v2508_v30, %v307_v28  ;;  %v309_v36 = vxor.u32 %v305_v33, %v2500_v25  ;;  %v321_v37 = vadd.s32 374761393, %v2515_v34  ;;  %v2143_v28 = vld [vmem:[#allocation9 + $0x220] ss:$16 sps:$4 sm:$0xff]  }
  0x70   :  { %v322_v35 = vadd.s32 374761393, %v2512_v32 }
  0x71   :  { %1170 = vmatpush1.bf16.msra.mxu0 %v2071_v39  ;;  %1252 = vmatpush1.bf16.msra.mxu1 %v2074_v45  ;;  %v2521_v39 = vadd.s32 %v2508_v30, %v309_v36  ;;  %v2154_v36 = vld [vmem:[#allocation9 + $0x24c] ss:$16 sps:$4 sm:$0xff]  }
  0x72   :  { %1171 = vmatprep.subr.bf16.mxu0 %v2079_v40  ;;  %1253 = vmatprep.subr.bf16.mxu1 %v2082_v46  ;;  %v326_v38 = vshrl.u32 %v322_v35, 16  ;;  %v325_v40 = vshrl.u32 %v321_v37, 16 }
  0x73   :  { %v324_v42 = vadd.s32 374761393, %v2521_v39 }
  0x74   :  { %v330_v41 = vxor.u32 %v326_v38, %v322_v35  ;;  %v2151_v35 = vld [vmem:[#allocation9 + $0x244] ss:$16 sps:$4 sm:$0xff]   ;;  %v2149_v38 = vld [vmem:[#allocation9 + $0x240] ss:$16 sps:$4 sm:$0xff]  }
  0x75   :  { %1172 = vmatpush1.bf16.msra.mxu0 %v2077_v43  ;;  %1254 = vmatpush1.bf16.msra.mxu1 %v2080_v49  ;;  %v329_v43 = vxor.u32 %v325_v40, %v321_v37  ;;  %v328_v45 = vshrl.u32 %v324_v42, 16  ;;  %v2152_v40 = vld [vmem:[#allocation9 + $0x248] ss:$16 sps:$4 sm:$0xff]  }
  0x76   :  { %1173 = vmatprep.subr.bf16.mxu0 %v2085_v44  ;;  %1255 = vmatprep.subr.bf16.mxu1 %v2088_v50  ;;  %v334_v44 = vmul.u32 2246822507, %v330_v41  ;;  %v2157_v41 = vld [vmem:[#allocation9 + $0x264] ss:$16 sps:$4 sm:$0xff]  }
  0x77   :  { %v333_v46 = vmul.u32 2246822507, %v329_v43  ;;  %v299_v43 = vadd.s32 256, %v2494_v22 }
  0x79   :  { %1174 = vmatpush1.bf16.msra.mxu0 %v2083_v47  ;;  %1256 = vmatpush1.bf16.msra.mxu1 %v2086_v51  ;;  %v338_v47 = vshrl.u32 %v334_v44, 13  ;;  %v337_v49 = vshrl.u32 %v333_v46, 13 }
  0x7a   :  { %1175 = vmatprep.subr.bf16.mxu0 %v2091_v48  ;;  %1257 = vmatprep.subr.bf16.mxu1 %v2094_v53  ;;  %v332_v48 = vxor.u32 %v328_v45, %v324_v42  ;;  %v2160_v42 = vld [vmem:[#allocation9 + $0x26c] ss:$16 sps:$4 sm:$0xff]   ;;  %v2158_v45 = vld [vmem:[#allocation9 + $0x268] ss:$16 sps:$4 sm:$0xff]  }
  0x7b   :  { %v342_v50 = vxor.u32 %v338_v47, %v334_v44  ;;  %v2155_v44 = vld [vmem:[#allocation9 + $0x260] ss:$16 sps:$4 sm:$0xff]   ;;  %v2166_v47 = vld [vmem:[#allocation9 + $0x28c] ss:$16 sps:$4 sm:$0xff]  }
  0x7c   :  { %v336_v51 = vmul.u32 2246822507, %v332_v48  ;;  %v304_v48 = vmul.u32 2246822519, %v299_v43  ;;  %v2223_v43 = vld [vmem:[#allocation9 + $0x3c4] ss:$16 sps:$4 sm:$0xff]  }
  0x7d   :  { %1176 = vmatpush1.bf16.msra.mxu0 %v2089_v52  ;;  %1258 = vmatpush1.bf16.msra.mxu1 %v2092_v57  ;;  %v341_v52 = vxor.u32 %v337_v49, %v333_v46  ;;  %v346_v53 = vmul.u32 3266489909, %v342_v50  ;;  %v2528_v57 = vld [vmem:[%s2587_s3] sm:$0xf]  ;;  %v2163_v46 = vld [vmem:[#allocation9 + $0x284] ss:$16 sps:$4 sm:$0xff]  }
  0x7e   :  { %1177 = vmatprep.subr.bf16.mxu0 %v2097_v54  ;;  %1259 = vmatprep.subr.bf16.mxu1 %v2100_v58  ;;  %v340_v54 = vshrl.u32 %v336_v51, 13  ;;  %v110_v58 = vsub.s32 1, %v2496_v23  ;;  %v2161_v49 = vld [vmem:[#allocation9 + $0x280] ss:$16 sps:$4 sm:$0xff]   ;;  %v2164_v50 = vld [vmem:[#allocation9 + $0x288] ss:$16 sps:$4 sm:$0xff]   ;;  %v308_v22 = vxor.u32 %v304_v48, %v2500_v25 }
  0x81   :  { %1178 = vmatpush1.bf16.msra.mxu0 %v2095_v55  ;;  %1260 = vmatpush1.bf16.msra.mxu1 %v2098_v61  ;;  %v345_v55 = vmul.u32 3266489909, %v341_v52  ;;  %v2172_v52 = vld [vmem:[#allocation9 + $0x2ac] ss:$16 sps:$4 sm:$0xff]  }
  0x82   :  { %1179 = vmatprep.subr.bf16.mxu0 %v2103_v56  ;;  %1261 = vmatprep.subr.bf16.mxu1 %v2106_v62  ;;  %v106_v56 = vsub.s32 0, %v2496_v23 }
  0x83   :  { %v349_v61 = vshrl.u32 %v345_v55, 16 }
  0x84   :  { %v107_v62 = vrot.slane %v2528_v57, %v106_v56 }
  0x85   :  { %1180 = vmatpush1.bf16.msra.mxu0 %v2101_v59  ;;  %1262 = vmatpush1.bf16.msra.mxu1 %v2104_v1  ;;  %v350_v59 = vshrl.u32 %v346_v53, 16 }
  0x86   :  { %1181 = vmatprep.subr.bf16.mxu0 %v2109_v60  ;;  %1263 = vmatprep.subr.bf16.mxu1 %v2112_v2  ;;  %v344_v60 = vxor.u32 %v340_v54, %v336_v51  ;;  %v353_v2 = vxor.u32 %v349_v61, %v345_v55  ;;  %v2169_v51 = vld [vmem:[#allocation9 + $0x2a4] ss:$16 sps:$4 sm:$0xff]   ;;  %v2170_v54 = vld [vmem:[#allocation9 + $0x2a8] ss:$16 sps:$4 sm:$0xff]   ;;  %v2173_v61 = vld [vmem:[#allocation9 + $0x2c0] ss:$16 sps:$4 sm:$0xff]  }
  0x87   :  { %v2175_v55 = vld [vmem:[#allocation9 + $0x2c4] ss:$16 sps:$4 sm:$0xff]  }
  0x88   :  { %v348_v1 = vmul.u32 3266489909, %v344_v60  ;;  %vm357_vm2 = vcmp.ge.u32.totalorder %v353_v2, 429496729  ;;  %v2546_v60 = vadd.s32 %v2508_v30, %v308_v22  ;;  %v2182_v2 = vld [vmem:[#allocation9 + $0x2e8] ss:$16 sps:$4 sm:$0xff]  }
  0x89   :  { %1182 = vmatpush1.bf16.msra.mxu0 %v2107_v63  ;;  %1264 = vmatpush1.bf16.msra.mxu1 %v2110_v5  ;;  %v111_v63 = vrot.slane %v2528_v57, %v110_v58  ;;  %vm1885_vm4 = vmpackc.low %vm357_vm2, %vm357_vm2 }
  0x8a   :  { %1183 = vmatprep.subr.bf16.mxu0 %v2115_v0  ;;  %1265 = vmatprep.subr.bf16.mxu1 %v2118_v6  ;;  %v354_v0 = vxor.u32 %v350_v59, %v346_v53  ;;  %v2167_v53 = vld [vmem:[#allocation9 + $0x2a0] ss:$16 sps:$4 sm:$0xff]   ;;  %v2178_v59 = vld [vmem:[#allocation9 + $0x2cc] ss:$16 sps:$4 sm:$0xff]   ;;  %v323_v25 = vadd.s32 374761393, %v2546_v60 }
  0x8c   :  { %vm358_vm1 = vcmp.ge.u32.totalorder %v354_v0, 429496729  ;;  %v2184_v0 = vld [vmem:[#allocation9 + $0x2ec] ss:$16 sps:$4 sm:$0xff]   ;;  %v327_v30 = vshrl.u32 %v323_v25, 16 }
  0x8d   :  { %1184 = vmatpush1.bf16.msra.mxu0 %v2113_v3  ;;  %1266 = vmatpush1.bf16.msra.mxu1 %v2116_v8  ;;  %vm1882_vm3 = vmpackc.low %vm358_vm1, %vm358_vm1 }
  0x8e   :  { %1185 = vmatprep.subr.bf16.mxu0 %v2121_v4  ;;  %1267 = vmatprep.subr.bf16.mxu1 %v2124_v9  ;;  %v118_v4 = vsub.s32 3, %v2496_v23  ;;  %v352_v9 = vshrl.u32 %v348_v1, 16 }
  0x91   :  { %1186 = vmatpush1.bf16.msra.mxu0 %v2119_v7  ;;  %1268 = vmatpush1.bf16.msra.mxu1 %v2122_v10 }
  0x92   :  { %1187 = vmatprep.subr.bf16.mxu0 %v2127_v11  ;;  %1269 = vmatprep.subr.bf16.mxu1 %v2130_v12 }
  0x95   :  { %1188 = vmatpush1.bf16.msra.mxu0 %v2125_v13  ;;  %1270 = vmatpush1.bf16.msra.mxu1 %v2128_v14  ;;  %v119_v13 = vrot.slane %v2528_v57, %v118_v4 }
  0x96   :  { %1189 = vmatprep.subr.bf16.mxu0 %v2133_v15  ;;  %1271 = vmatprep.subr.bf16.mxu1 %v2136_v16  ;;  %v2137_v15 = vld [vmem:[#allocation9 + $0x200] ss:$16 sps:$4 sm:$0xff]   ;;  %v2140_v16 = vld [vmem:[#allocation9 + $0x208] ss:$16 sps:$4 sm:$0xff]  }
  0x99   :  { %1190 = vmatpush1.bf16.msra.mxu0 %v2131_v17  ;;  %1272 = vmatpush1.bf16.msra.mxu1 %v2134_v18  ;;  %v356_v18 = vxor.u32 %v352_v9, %v348_v1  ;;  %v2179_v1 = vld [vmem:[#allocation9 + $0x2e0] ss:$16 sps:$4 sm:$0xff]   ;;  %v2196_v9 = vld [vmem:[#allocation9 + $0x32c] ss:$16 sps:$4 sm:$0xff]  }
  0x9a   :  { %1200 = vmatprep.subr.bf16.mxu0 %v2139_v19  ;;  %1282 = vmatprep.subr.bf16.mxu1 %v2142_v20  ;;  %v2145_v20 = vld [vmem:[#allocation9 + $0x224] ss:$16 sps:$4 sm:$0xff]  }
  0x9b   :  { %vm360_vm5 = vcmp.ge.u32.totalorder %v356_v18, 429496729  ;;  %v2200_v18 = vld [vmem:[#allocation9 + $0x348] ss:$16 sps:$4 sm:$0xff]  }
  0x9c   :  { %vm1888_vm6 = vmpackc.low %vm360_vm5, %vm360_vm5 }
 0x12f   :  { %v242_v3 = vpop.f32.mrb[0].mxu0  ;;  %v2541_v17 = vpop.f32.mrb[0].mxu1 }
 0x130   :  { %v243_v5 = vadd.f32 %v242_v3, %v107_v62  ;;  %v244_v6 = vpop.f32.mrb[1].mxu0  ;;  %v285_v24 = vpop.f32.mrb[1].mxu1  ;;  %v2176_v62 = vld [vmem:[#allocation9 + $0x2c8] ss:$16 sps:$4 sm:$0xff]   ;;  %v2187_v3 = vld [vmem:[#allocation9 + $0x304] ss:$16 sps:$4 sm:$0xff]  }
 0x131   :  { %v245_v7 = vadd.f32 %v244_v6, %v111_v63  ;;  %v246_v8 = vpop.f32.mrb[2].mxu0  ;;  %v286_v26 = vadd.f32 %v285_v24, %v119_v13  ;;  %v287_v27 = vpop.f32.mrb[2].mxu1  ;;  %v2181_v63 = vld [vmem:[#allocation9 + $0x2e4] ss:$16 sps:$4 sm:$0xff]   ;;  %v2185_v6 = vld [vmem:[#allocation9 + $0x300] ss:$16 sps:$4 sm:$0xff]  }
 0x132   :  { %v290_v10 = vmax.f32 %v243_v5, 0.0  ;;  %v247_v11 = vpop.f32.mrb[3].mxu0  ;;  %v288_v29 = vpop.f32.mrb[3].mxu1  ;;  %v2190_v5 = vld [vmem:[#allocation9 + $0x30c] ss:$16 sps:$4 sm:$0xff]  }
 0x133   :  { %v291_v12 = vmax.f32 %v245_v7, 0.0  ;;  %v293_v33 = vmax.f32 %v286_v26, 0.0  ;;  %v2188_v7 = vld [vmem:[#allocation9 + $0x308] ss:$16 sps:$4 sm:$0xff]   ;;  %v2193_v8 = vld [vmem:[#allocation9 + $0x324] ss:$16 sps:$4 sm:$0xff]  }
 0x134   :  { %v1886_v19 = vpack.c.bf16 %v290_v10, %v290_v10  ;;  %v331_v10 = vxor.u32 %v327_v30, %v323_v25  ;;  %v2191_v11 = vld [vmem:[#allocation9 + $0x320] ss:$16 sps:$4 sm:$0xff]   ;;  %v2199_v13 = vld [vmem:[#allocation9 + $0x344] ss:$16 sps:$4 sm:$0xff]   ;;  %v2206_v26 = vld [vmem:[#allocation9 + $0x368] ss:$16 sps:$4 sm:$0xff]  }
 0x135   :  { %v1883_v14 = vpack.c.bf16 %v291_v12, %v291_v12  ;;  %v1889_v37 = vpack.c.bf16 %v293_v33, %v293_v33  ;;  %v2194_v12 = vld [vmem:[#allocation9 + $0x328] ss:$16 sps:$4 sm:$0xff]   ;;  %v2203_v24 = vld [vmem:[#allocation9 + $0x360] ss:$16 sps:$4 sm:$0xff]   ;;  %v2211_v27 = vld [vmem:[#allocation9 + $0x384] ss:$16 sps:$4 sm:$0xff]  }
 0x136   :  { %v2212_v33 = vld [vmem:[#allocation9 + $0x388] ss:$16 sps:$4 sm:$0xff]   ;;  %v2241_v25 = vld [vmem:[#allocation10 + $0x50] sm:$0xff]  }
 0x137   :  { %1884 = vmatprep.mubr.msk.bf16.mxu0 %vm1882_vm3, %v1883_v14  ;;  %1896 = vmatprep.mubr.msk.bf16.mxu1 %vm1882_vm3, %v1883_v14  ;;  %v2202_v14 = vld [vmem:[#allocation9 + $0x34c] ss:$16 sps:$4 sm:$0xff]  }
 0x138   :  { %1887 = vmatmul.mubr.msk.bf16.vlgmr.msra.gmra.mrb[4].mxu0 %vm1885_vm4, %v1886_v19  ;;  %1899 = vmatmul.mubr.msk.bf16.vlgmr.msra.gmra.mrb[4].mxu1 %vm1885_vm4, %v1886_v19  ;;  %v2205_v19 = vld [vmem:[#allocation9 + $0x364] ss:$16 sps:$4 sm:$0xff]   ;;  %v2246_v30 = vld [vmem:[#allocation10 + $0xd8] sm:$0xff]  }
 0x139   :  { %1201 = vmatpush1.bf16.msra.mxu0 %v2137_v15  ;;  %1283 = vmatpush1.bf16.msra.mxu1 %v2140_v16  ;;  %v335_v15 = vmul.u32 2246822507, %v331_v10  ;;  %v2197_v16 = vld [vmem:[#allocation9 + $0x340] ss:$16 sps:$4 sm:$0xff]  }
 0x13a   :  { %1202 = vmatprep.subr.bf16.mxu0 %v2145_v20  ;;  %1284 = vmatprep.subr.bf16.mxu1 %v2148_v21  ;;  %v2208_v20 = vld [vmem:[#allocation9 + $0x36c] ss:$16 sps:$4 sm:$0xff]   ;;  %v2251_v10 = vld [vmem:[#allocation10 + $0x20] sm:$0xff]  }
 0x13b   :  { %1890 = vmatprep.mubr.msk.bf16.mxu0 %vm1888_vm6, %v1889_v37  ;;  %1902 = vmatprep.mubr.msk.bf16.mxu1 %vm1888_vm6, %v1889_v37  ;;  %v339_v21 = vshrl.u32 %v335_v15, 13  ;;  %v2220_v37 = vld [vmem:[#allocation9 + $0x3ac] ss:$16 sps:$4 sm:$0xff]  }
 0x13d   :  { %1203 = vmatpush1.bf16.msra.mxu0 %v2143_v28  ;;  %1285 = vmatpush1.bf16.msra.mxu1 %v2146_v31  ;;  %v2214_v28 = vld [vmem:[#allocation9 + $0x38c] ss:$16 sps:$4 sm:$0xff]   ;;  %v343_v29 = vxor.u32 %v339_v21, %v335_v15  ;;  %v2209_v31 = vld [vmem:[#allocation9 + $0x380] ss:$16 sps:$4 sm:$0xff]  }
 0x13e   :  { %1204 = vmatprep.subr.bf16.mxu0 %v2151_v35  ;;  %1286 = vmatprep.subr.bf16.mxu1 %v2154_v36  ;;  %v114_v35 = vsub.s32 2, %v2496_v23  ;;  %v2217_v36 = vld [vmem:[#allocation9 + $0x3a4] ss:$16 sps:$4 sm:$0xff]   ;;  %v2256_v15 = vld [vmem:[#allocation10 + $0xa8] sm:$0xff]   ;;  %v2261_v21 = vld [vmem:[#allocation10 + $0x78] sm:$0xff]  }
 0x141   :  { %1205 = vmatpush1.bf16.msra.mxu0 %v2149_v38  ;;  %1287 = vmatpush1.bf16.msra.mxu1 %v2152_v40  ;;  %v347_v38 = vmul.u32 3266489909, %v343_v29  ;;  %v2215_v40 = vld [vmem:[#allocation9 + $0x3a0] ss:$16 sps:$4 sm:$0xff]   ;;  %v1330_v29 = vadd.s32 749522786, %v2521_v39 }
 0x142   :  { %1206 = vmatprep.subr.bf16.mxu0 %v2157_v41  ;;  %1288 = vmatprep.subr.bf16.mxu1 %v2160_v42  ;;  %v2218_v41 = vld [vmem:[#allocation9 + $0x3a8] ss:$16 sps:$4 sm:$0xff]   ;;  %v115_v42 = vrot.slane %v2528_v57, %v114_v35 }
 0x143   :  { %v2230_v57 = vld [vmem:[#allocation9 + $0x3e8] ss:$16 sps:$4 sm:$0xff]  }
 0x144   :  { %v284_v48 = vadd.f32 %v2541_v17, %v115_v42  ;;  %v2236_v17 = vld [vmem:[#allocation10 + $0x80] sm:$0xff]  }
 0x145   :  { %1207 = vmatpush1.bf16.msra.mxu0 %v2155_v44  ;;  %1289 = vmatpush1.bf16.msra.mxu1 %v2158_v45  ;;  %v2226_v44 = vld [vmem:[#allocation9 + $0x3cc] ss:$16 sps:$4 sm:$0xff]   ;;  %v351_v45 = vshrl.u32 %v347_v38, 16 }
 0x146   :  { %1208 = vmatprep.subr.bf16.mxu0 %v2163_v46  ;;  %1290 = vmatprep.subr.bf16.mxu1 %v2166_v47  ;;  %v2221_v46 = vld [vmem:[#allocation9 + $0x3c0] ss:$16 sps:$4 sm:$0xff]   ;;  %v2224_v47 = vld [vmem:[#allocation9 + $0x3c8] ss:$16 sps:$4 sm:$0xff]   ;;  %v292_v22 = vmax.f32 %v284_v48, 0.0 }
 0x149   :  { %1209 = vmatpush1.bf16.msra.mxu0 %v2161_v49  ;;  %1291 = vmatpush1.bf16.msra.mxu1 %v2164_v50  ;;  %v2229_v49 = vld [vmem:[#allocation9 + $0x3e4] ss:$16 sps:$4 sm:$0xff]   ;;  %v2232_v50 = vld [vmem:[#allocation9 + $0x3ec] ss:$16 sps:$4 sm:$0xff]  }
 0x14a   :  { %1210 = vmatprep.subr.bf16.mxu0 %v2169_v51  ;;  %1292 = vmatprep.subr.bf16.mxu1 %v2172_v52  ;;  %v355_v51 = vxor.u32 %v351_v45, %v347_v38  ;;  %v2227_v52 = vld [vmem:[#allocation9 + $0x3e0] ss:$16 sps:$4 sm:$0xff]  }
 0x14c   :  { %vm359_vm7 = vcmp.ge.u32.totalorder %v355_v51, 429496729 }
 0x14d   :  { %1211 = vmatpush1.bf16.msra.mxu0 %v2167_v53  ;;  %1293 = vmatpush1.bf16.msra.mxu1 %v2170_v54  ;;  %v2233_v53 = vld [vmem:[#allocation10 + $0x40] sm:$0xff]   ;;  %vm1891_vm8 = vmpackc.low %vm359_vm7, %vm359_vm7 }
 0x14e   :  { %1212 = vmatprep.subr.bf16.mxu0 %v2175_v55  ;;  %1294 = vmatprep.subr.bf16.mxu1 %v2178_v59  ;;  %v2234_v54 = vld [vmem:[#allocation10 + $0xc0] sm:$0xff]   ;;  %v1892_v59 = vpack.c.bf16 %v292_v22, %v292_v22 }
 0x14f   :  { %v2235_v55 = vld [vmem:[#allocation10] sm:$0xff]  }
 0x151   :  { %1213 = vmatpush1.bf16.msra.mxu0 %v2173_v61  ;;  %1295 = vmatpush1.bf16.msra.mxu1 %v2176_v62  ;;  %v2237_v61 = vld [vmem:[#allocation10 + $0x48] sm:$0xff]  }
 0x152   :  { %1214 = vmatprep.subr.bf16.mxu0 %v2181_v63  ;;  %1296 = vmatprep.subr.bf16.mxu1 %v2184_v0  ;;  %v2238_v62 = vld [vmem:[#allocation10 + $0xc8] sm:$0xff]  }
 0x153   :  { %v2239_v63 = vld [vmem:[#allocation10 + $0x8] sm:$0xff]  }
 0x154   :  { %v2240_v0 = vld [vmem:[#allocation10 + $0x88] sm:$0xff]  }
 0x155   :  { %1215 = vmatpush1.bf16.msra.mxu0 %v2179_v1  ;;  %1297 = vmatpush1.bf16.msra.mxu1 %v2182_v2  ;;  %v2242_v1 = vld [vmem:[#allocation10 + $0xd0] sm:$0xff]  }
 0x156   :  { %1216 = vmatprep.subr.bf16.mxu0 %v2187_v3  ;;  %1298 = vmatprep.subr.bf16.mxu1 %v2190_v5  ;;  %v2243_v2 = vld [vmem:[#allocation10 + $0x10] sm:$0xff]   ;;  %v2245_v5 = vld [vmem:[#allocation10 + $0x58] sm:$0xff]  }
 0x157   :  { %v2244_v3 = vld [vmem:[#allocation10 + $0x90] sm:$0xff]  }
 0x159   :  { %1217 = vmatpush1.bf16.msra.mxu0 %v2185_v6  ;;  %1299 = vmatpush1.bf16.msra.mxu1 %v2188_v7  ;;  %v2247_v6 = vld [vmem:[#allocation10 + $0x18] sm:$0xff]  }
 0x15a   :  { %1218 = vmatprep.subr.bf16.mxu0 %v2193_v8  ;;  %1300 = vmatprep.subr.bf16.mxu1 %v2196_v9  ;;  %v2248_v7 = vld [vmem:[#allocation10 + $0x98] sm:$0xff]   ;;  %v2249_v8 = vld [vmem:[#allocation10 + $0x60] sm:$0xff]  }
 0x15b   :  { %v2250_v9 = vld [vmem:[#allocation10 + $0xe0] sm:$0xff]  }
 0x15d   :  { %1219 = vmatpush1.bf16.msra.mxu0 %v2191_v11  ;;  %1301 = vmatpush1.bf16.msra.mxu1 %v2194_v12  ;;  %v2252_v11 = vld [vmem:[#allocation10 + $0xa0] sm:$0xff]   ;;  %v2253_v12 = vld [vmem:[#allocation10 + $0x68] sm:$0xff]  }
 0x15e   :  { %1220 = vmatprep.subr.bf16.mxu0 %v2199_v13  ;;  %1302 = vmatprep.subr.bf16.mxu1 %v2202_v14  ;;  %v2254_v13 = vld [vmem:[#allocation10 + $0xe8] sm:$0xff]  }
 0x15f   :  { %v2255_v14 = vld [vmem:[#allocation10 + $0x28] sm:$0xff]  }
 0x161   :  { %1221 = vmatpush1.bf16.msra.mxu0 %v2197_v16  ;;  %1303 = vmatpush1.bf16.msra.mxu1 %v2200_v18  ;;  %v2257_v16 = vld [vmem:[#allocation10 + $0x70] sm:$0xff]  }
 0x162   :  { %1222 = vmatprep.subr.bf16.mxu0 %v2205_v19  ;;  %1304 = vmatprep.subr.bf16.mxu1 %v2208_v20  ;;  %v2258_v18 = vld [vmem:[#allocation10 + $0xf0] sm:$0xff]  }
 0x163   :  { %v2259_v19 = vld [vmem:[#allocation10 + $0x30] sm:$0xff]  }
 0x164   :  { %v2260_v20 = vld [vmem:[#allocation10 + $0xb0] sm:$0xff]  }
 0x165   :  { %1223 = vmatpush1.bf16.msra.mxu0 %v2203_v24  ;;  %1305 = vmatpush1.bf16.msra.mxu1 %v2206_v26  ;;  %v2262_v24 = vld [vmem:[#allocation10 + $0xf8] sm:$0xff]  }
 0x166   :  { %1224 = vmatprep.subr.bf16.mxu0 %v2211_v27  ;;  %1306 = vmatprep.subr.bf16.mxu1 %v2214_v28  ;;  %v2263_v26 = vld [vmem:[#allocation10 + $0x38] sm:$0xff]   ;;  %v1328_v28 = vadd.s32 749522786, %v2512_v32 }
 0x167   :  { %v2264_v27 = vld [vmem:[#allocation10 + $0xb8] sm:$0xff]  }
 0x169   :  { %1225 = vmatpush1.bf16.msra.mxu0 %v2209_v31  ;;  %1307 = vmatpush1.bf16.msra.mxu1 %v2212_v33  ;;  %v1327_v31 = vadd.s32 749522786, %v2515_v34  ;;  %v1329_v33 = vadd.s32 749522786, %v2546_v60 }
 0x16a   :  { %1226 = vmatprep.subr.bf16.mxu0 %v2217_v36  ;;  %1308 = vmatprep.subr.bf16.mxu1 %v2220_v37  ;;  %v1332_v36 = vshrl.u32 %v1328_v28, 16  ;;  %v1334_v37 = vshrl.u32 %v1330_v29, 16 }
 0x16b   :  { %v1331_v38 = vshrl.u32 %v1327_v31, 16 }
 0x16c   :  { %v1338_v42 = vxor.u32 %v1334_v37, %v1330_v29 }
 0x16d   :  { %1227 = vmatpush1.bf16.msra.mxu0 %v2215_v40  ;;  %1309 = vmatpush1.bf16.msra.mxu1 %v2218_v41  ;;  %v1333_v40 = vshrl.u32 %v1329_v33, 16  ;;  %v1336_v41 = vxor.u32 %v1332_v36, %v1328_v28 }
 0x16e   :  { %1228 = vmatprep.subr.bf16.mxu0 %v2223_v43  ;;  %1310 = vmatprep.subr.bf16.mxu1 %v2226_v44  ;;  %v1335_v43 = vxor.u32 %v1331_v38, %v1327_v31 }
 0x16f   :  { %v1337_v44 = vxor.u32 %v1333_v40, %v1329_v33  ;;  %v1340_v45 = vmul.u32 2246822507, %v1336_v41 }
 0x171   :  { %1229 = vmatpush1.bf16.msra.mxu0 %v2221_v46  ;;  %1311 = vmatpush1.bf16.msra.mxu1 %v2224_v47  ;;  %v1342_v46 = vmul.u32 2246822507, %v1338_v42  ;;  %v1339_v47 = vmul.u32 2246822507, %v1335_v43 }
 0x172   :  { %1230 = vmatprep.subr.bf16.mxu0 %v2229_v49  ;;  %1312 = vmatprep.subr.bf16.mxu1 %v2232_v50  ;;  %v1341_v48 = vmul.u32 2246822507, %v1337_v44  ;;  %v1344_v49 = vshrl.u32 %v1340_v45, 13 }
 0x173   :  { %v1346_v32 = vshrl.u32 %v1342_v46, 13  ;;  %v1343_v50 = vshrl.u32 %v1339_v47, 13 }
 0x174   :  { %v1345_v39 = vshrl.u32 %v1341_v48, 13  ;;  %v1348_v51 = vxor.u32 %v1344_v49, %v1340_v45 }
 0x175   :  { %1231 = vmatpush1.bf16.msra.mxu0 %v2227_v52  ;;  %1313 = vmatpush1.bf16.msra.mxu1 %v2230_v57  ;;  %v1350_v34 = vxor.u32 %v1346_v32, %v1342_v46  ;;  %v1347_v52 = vxor.u32 %v1343_v50, %v1339_v47 }
 0x176   :  { %1951 = vmatprep.subr.bf16.mxu0 %v2233_v53  ;;  %1973 = vmatprep.subr.bf16.mxu1 %v2234_v54  ;;  %v1349_v60 = vxor.u32 %v1345_v39, %v1341_v48  ;;  %v1352_v57 = vmul.u32 3266489909, %v1348_v51 }
 0x177   :  { %v1354_v22 = vmul.u32 3266489909, %v1350_v34  ;;  %v1351_v53 = vmul.u32 3266489909, %v1347_v52 }
 0x178   :  { %1893 = vmatmul.mubr.msk.bf16.vlgmr.msra.gmra.mrb[4].mxu0 %vm1891_vm8, %v1892_v59  ;;  %1905 = vmatmul.mubr.msk.bf16.vlgmr.msra.gmra.mrb[4].mxu1 %vm1891_vm8, %v1892_v59  ;;  %v1353_v54 = vmul.u32 3266489909, %v1349_v60  ;;  %v497_v59 = vld [vmem:[%s2589_s5] sm:$0xf] }
 0x179   :  { %1952 = vmatpush3.bf16.msra.mxu0 %v2235_v55  ;;  %1974 = vmatpush3.bf16.msra.mxu1 %v2236_v17  ;;  %v1356_v55 = vshrl.u32 %v1352_v57, 16  ;;  %v1358_v17 = vshrl.u32 %v1354_v22, 16 }
 0x17a   :  { %1953 = vmatprep.subr.bf16.mxu0 %v2237_v61  ;;  %1975 = vmatprep.subr.bf16.mxu1 %v2238_v62  ;;  %v1355_v61 = vshrl.u32 %v1351_v53, 16  ;;  %v1357_v62 = vshrl.u32 %v1353_v54, 16 }
 0x17d   :  { %1954 = vmatpush3.bf16.msra.mxu0 %v2239_v63  ;;  %1976 = vmatpush3.bf16.msra.mxu1 %v2240_v0  ;;  %v1360_v63 = vxor.u32 %v1356_v55, %v1352_v57  ;;  %v502_v0 = vrot.slane %v497_v59, %v106_v56 }
 0x17e   :  { %1955 = vmatprep.subr.bf16.mxu0 %v2241_v25  ;;  %1977 = vmatprep.subr.bf16.mxu1 %v2242_v1  ;;  %v510_v25 = vrot.slane %v497_v59, %v114_v35  ;;  %v1362_v1 = vxor.u32 %v1358_v17, %v1354_v22 }
 0x17f   :  { %vm1364_vm9 = vcmp.ge.u32.totalorder %v1360_v63, 429496729 }
 0x180   :  { %vm1366_vm10 = vcmp.ge.u32.totalorder %v1362_v1, 429496729  ;;  %vm1939_vm12 = vmpackc.low %vm1364_vm9, %vm1364_vm9 }
 0x181   :  { %1956 = vmatpush3.bf16.msra.mxu0 %v2243_v2  ;;  %1978 = vmatpush3.bf16.msra.mxu1 %v2244_v3  ;;  %v506_v2 = vrot.slane %v497_v59, %v110_v58  ;;  %v514_v3 = vrot.slane %v497_v59, %v118_v4  ;;  %vm1945_vm14 = vmpackc.low %vm1366_vm10, %vm1366_vm10 }
 0x182   :  { %1957 = vmatprep.subr.bf16.mxu0 %v2245_v5  ;;  %1979 = vmatprep.subr.bf16.mxu1 %v2246_v30  ;;  %v1359_v5 = vxor.u32 %v1355_v61, %v1351_v53  ;;  %v1361_v30 = vxor.u32 %v1357_v62, %v1353_v54 }
 0x184   :  { %vm1363_vm11 = vcmp.ge.u32.totalorder %v1359_v5, 429496729  ;;  %vm1365_vm13 = vcmp.ge.u32.totalorder %v1361_v30, 429496729 }
 0x185   :  { %1958 = vmatpush3.bf16.msra.mxu0 %v2247_v6  ;;  %1980 = vmatpush3.bf16.msra.mxu1 %v2248_v7  ;;  %vm1942_vm15 = vmpackc.low %vm1363_vm11, %vm1363_vm11 }
 0x186   :  { %1959 = vmatprep.subr.bf16.mxu0 %v2249_v8  ;;  %1981 = vmatprep.subr.bf16.mxu1 %v2250_v9  ;;  %vm1948_vm0 = vmpackc.low %vm1365_vm13, %vm1365_vm13 }
 0x189   :  { %1960 = vmatpush3.bf16.msra.mxu0 %v2251_v10  ;;  %1982 = vmatpush3.bf16.msra.mxu1 %v2252_v11 }
 0x18a   :  { %1961 = vmatprep.subr.bf16.mxu0 %v2253_v12  ;;  %1983 = vmatprep.subr.bf16.mxu1 %v2254_v13 }
 0x18d   :  { %1962 = vmatpush3.bf16.msra.mxu0 %v2255_v14  ;;  %1984 = vmatpush3.bf16.msra.mxu1 %v2256_v15 }
 0x18e   :  { %1963 = vmatprep.subr.bf16.mxu0 %v2257_v16  ;;  %1985 = vmatprep.subr.bf16.mxu1 %v2258_v18 }
 0x191   :  { %1964 = vmatpush3.bf16.msra.mxu0 %v2259_v19  ;;  %1986 = vmatpush3.bf16.msra.mxu1 %v2260_v20 }
 0x192   :  { %1965 = vmatprep.subr.bf16.mxu0 %v2261_v21  ;;  %1987 = vmatprep.subr.bf16.mxu1 %v2262_v24 }
 0x195   :  { %1966 = vmatpush3.bf16.msra.mxu0 %v2263_v26  ;;  %1988 = vmatpush3.bf16.msra.mxu1 %v2264_v27  ;;  %v1906_v27 = vld [vmem:[%s2591_s7] ss:$0 sm:$0xff] }
 0x24b   :  { %v1234_v6 = vpop.f32.mrb[4].mxu0  ;;  %v1316_v7 = vpop.f32.mrb[4].mxu1 }
 0x24c   :  { %v1995_v8 = vadd.f32 %v1234_v6, %v502_v0  ;;  %v1997_v9 = vadd.f32 %v1316_v7, %v510_v25  ;;  %v1236_v10 = vpop.f32.mrb[5].mxu0  ;;  %v1318_v11 = vpop.f32.mrb[5].mxu1 }
 0x24d   :  { %v1996_v56 = vadd.f32 %v1236_v10, %v506_v2  ;;  %v1998_v12 = vadd.f32 %v1318_v11, %v514_v3  ;;  %v1238_v35 = vpop.f32.mrb[6].mxu0  ;;  %v1320_v13 = vpop.f32.mrb[6].mxu1 }
 0x24e   :  { %v1323_v14 = vmax.f32 %v1995_v8, 0.0  ;;  %v1325_v58 = vmax.f32 %v1997_v9, 0.0  ;;  %v1239_v15 = vpop.f32.mrb[7].mxu0  ;;  %v1321_v23 = vpop.f32.mrb[7].mxu1 }
 0x24f   :  { %v1324_v4 = vmax.f32 %v1996_v56, 0.0  ;;  %v1326_v16 = vmax.f32 %v1998_v12, 0.0 }
 0x250   :  { %v1943_v20 = vpack.c.bf16 %v1323_v14, %v1323_v14  ;;  %v1949_v21 = vpack.c.bf16 %v1325_v58, %v1325_v58 }
 0x251   :  { %v1940_v18 = vpack.c.bf16 %v1324_v4, %v1324_v4  ;;  %v1946_v19 = vpack.c.bf16 %v1326_v16, %v1326_v16 }
 0x253   :  { %1941 = vmatprep.mubr.msk.bf16.mxu0 %vm1939_vm12, %v1940_v18  ;;  %1947 = vmatprep.mubr.msk.bf16.mxu1 %vm1945_vm14, %v1946_v19 }
 0x254   :  { %1944 = vmatmul.mubr.msk.bf16.vlgmr.msra.gmra.mrb[8].mxu0 %vm1942_vm15, %v1943_v20  ;;  %1950 = vmatmul.mubr.msk.bf16.vlgmr.msra.gmra.mrb[8].mxu1 %vm1948_vm0, %v1949_v21 }
 0x327   :  { %v1967_v24 = vpop.f32.mrb[8].mxu0  ;;  %v1989_v26 = vpop.f32.mrb[8].mxu1 }
 0x328   :  { %v1968_v28 = vpop.f32.mrb[9].mxu0  ;;  %v1990_v29 = vpop.f32.mrb[9].mxu1 }
 0x329   :  { %v1969_v31 = vadd.f32 %v1968_v28, %v1967_v24  ;;  %v1991_v33 = vadd.f32 %v1990_v29, %v1989_v26  ;;  %v1970_v36 = vpop.f32.mrb[10].mxu0  ;;  %v1992_v37 = vpop.f32.mrb[10].mxu1 }
 0x32a   :  { %v1971_v38 = vpop.f32.mrb[11].mxu0  ;;  %v1993_v40 = vpop.f32.mrb[11].mxu1 }
 0x32b   :  { %v1673_v41 = vadd.f32 %v1969_v31, %v1906_v27 }
 0x32d   :  { %v1713_v42 = vadd.f32 %v1991_v33, %v1673_v41 }
 0x32f   :  { %1718 = vst [vmem:[#allocation12] sm:$0xff] %v1713_v42 }
 0x330   :  { %2364 = shalt.err (!%p2361_p8)
}
 0x331   :  { %s2365_s19 = scalar_lea.hbm %s2592_s8, 128 }
 0x332   :  { %p2366_p9 = scmp.ne.s32.totalorder %s2592_s8, %s2365_s19  ;;  %p2369_p10 = scmp.lt.u32.totalorder %s2365_s19, %s2592_s8 }
 0x334   :  { %p2371_p11 = pnand %p2369_p10, %p2366_p9 }
 0x336   :  { %2374 = shalt.err (!%p2371_p11)
}
 0x337   :  { %1728 = dma.vmem_to_hbm [thread:$0]  %s1726_s14, 128, %s2592_s8, [#allocation6]  }
 0x338   :  { %2381 = dma.done.wait [#allocation6], 128  }
 0x339   :  { %2382 = vsyncadd [#allocation6], 4294967168 }
 0x33a   :  { %1732 = vsyncpa [#allocation5], 1 }
 0x33b   :  { %1733 = vsyncpa [#allocation8], 1 }
 0x33c   :  { %1734 = vsyncpa [#allocation11], 1 }
 0x33d   :  { %1735 = vsyncpa [#allocation6], 1 }

</bundles_post_ra>
